<compile_context>
chip_gen: v6e
topology: v6e:2x2x1
jax: 0.10.0
libtpu: 0.0.40
codegen_flags: <defaults>
</compile_context>

<pallas_src>
import jax
import jax.numpy as jnp
from jax.experimental import pallas as pl
from jax.experimental.pallas import tpu as pltpu


def _copy_kernel(x_ref, o_ref):
    # Pure pass-through copy of one lane-dense VMEM tile.
    o_ref[...] = x_ref[...]


def identity(x: jnp.ndarray) -> jnp.ndarray:
    """Identity forward pass (matches nn.Identity): return the input unchanged."""
    return x


def _lane_dense_layout(total: int):
    """Pick a (rows, lanes) factorization with lanes a multiple of 128.

    Prefers a layout whose row count is a multiple of 8 (full sublane use).
    Returns None if total is not divisible by 128.
    """
    for cand in (1024, 512, 256, 128):
        if total % cand == 0 and (total // cand) % 8 == 0:
            return total // cand, cand
    for cand in (1024, 512, 256, 128):
        if total % cand == 0:
            return total // cand, cand
    return None


def identity_copy(x: jnp.ndarray, *, alias_input: bool = False) -> jnp.ndarray:
    """Materialized identity: Pallas copy into a (possibly aliased) buffer.

    alias_input=True adds input_output_aliases={0: 0}; pair it with jit
    donation of `x` so no second HBM buffer is allocated.
    """
    total = int(x.size)
    itemsize = jnp.dtype(x.dtype).itemsize
    compiler_kwargs = {}

    layout = _lane_dense_layout(total)
    if layout is None:
        # Odd total size: single full-extent block (legal since block == array
        # dims). Raise the scoped-VMEM limit if the one block would not fit
        # under the default with double buffering on input + output.
        rows, lanes = 1, total
        block_rows = 1
        block_bytes = rows * lanes * itemsize
        needed = 4 * block_bytes + (1 << 20)  # 2 bufs x 2 arrays + headroom
        if needed > (32 << 20):
            compiler_kwargs["vmem_limit_bytes"] = min(needed, 100 << 20)
    else:
        rows, lanes = layout
        # ~4 MiB blocks: amortizes per-grid-step overhead, and with double
        # buffering on input + output (4 MiB * 2 * 2 = 16 MiB) fits the
        # default scoped VMEM limit on v5e/v6e/v7x alike.
        target_bytes = 4 * 1024 * 1024
        block_rows = max(8, target_bytes // (lanes * itemsize))
        block_rows -= block_rows % 8  # keep sublane tiling (multiple of 8)
        if block_rows >= rows:
            block_rows = rows  # full extent -> always a legal block shape

    flat = x.reshape(rows, lanes)  # free: contiguous row-major reshape
    out = pl.pallas_call(
        _copy_kernel,
        out_shape=jax.ShapeDtypeStruct((rows, lanes), x.dtype),
        grid=(pl.cdiv(rows, block_rows),),
        in_specs=[pl.BlockSpec((block_rows, lanes), lambda i: (i, 0))],
        out_specs=pl.BlockSpec((block_rows, lanes), lambda i: (i, 0)),
        compiler_params=pltpu.CompilerParams(
            # Single collapsed axis, marked parallel so v7x megacore can shard.
            dimension_semantics=("parallel",),
            **compiler_kwargs,
        ),
        input_output_aliases=({0: 0} if alias_input else {}),
    )(flat)
    return out.reshape(x.shape)


if __name__ == "__main__":
    key = jax.random.PRNGKey(0)
    # Small NCHW input consistent with a conv-style feature map.
    x = jax.random.normal(key, (2, 4, 16, 16), dtype=jnp.float32)

    # Fast path: true identity, zero data movement (the recommended form).
    y_fast = identity(x)
    # Materializing path: lane-dense Pallas copy (used when a fresh buffer is
    # required); exercised here to validate the kernel.
    y_copy = identity_copy(x)
    jax.block_until_ready((y_fast, y_copy))

    assert y_fast.shape == x.shape and y_fast.dtype == x.dtype
    assert y_copy.shape == x.shape and y_copy.dtype == x.dtype
    assert bool(jnp.all(y_fast == x))
    assert bool(jnp.all(y_copy == x))
    print("KERNEL_OK")
</pallas_src>

<mosaic_0001>
module attributes {stable_mosaic.version = 11 : i64} {
  func.func @_copy_kernel(%arg0: i32, %arg1: memref<8x256xf32, #tpu.memory_space<vmem>>, %arg2: memref<8x256xf32, #tpu.memory_space<vmem>>) attributes {dimension_semantics = [#tpu.dimension_semantics<parallel>], iteration_bounds = array<i64: 1>, scalar_prefetch = 0 : i64, scratch_operands = 0 : i64, tpu.core_type = #tpu.core_type<tc>, window_params = [{transform_indices = @transform_0, window_bounds = array<i64: 8, 256>}, {transform_indices = @transform_1, window_bounds = array<i64: 8, 256>}]} {
    %c0 = arith.constant 0 : index
    %c0_0 = arith.constant 0 : index
    %0 = vector.load %arg1[%c0, %c0_0] : memref<8x256xf32, #tpu.memory_space<vmem>>, vector<8x256xf32>
    %c0_1 = arith.constant 0 : index
    %c0_2 = arith.constant 0 : index
    %1 = vector.load %arg2[%c0_1, %c0_2] : memref<8x256xf32, #tpu.memory_space<vmem>>, vector<8x256xf32>
    tpu.vector_store %arg2[%c0_1, %c0_2], %0 {strides = array<i32>} : memref<8x256xf32, #tpu.memory_space<vmem>>, vector<8x256xf32>,
    return
  }
  func.func @transform_0(%arg0: i32) -> (i32, i32) {
    %c0_i32 = arith.constant 0 : i32
    %c0_i32_0 = arith.constant 0 : i32
    return %arg0, %c0_i32 : i32, i32
  }
  func.func @transform_1(%arg0: i32) -> (i32, i32) {
    %c0_i32 = arith.constant 0 : i32
    %c0_i32_0 = arith.constant 0 : i32
    return %arg0, %c0_i32 : i32, i32
  }
}

</mosaic_0001>

<bundles_post_ra>
// kernel: tpu_custom_call.1
= control target key start
LH: loop header
LB: loop body
LE: loop exit
PB: predicated region body
PF: predicated region fallthrough
CT: control target
= control target key end

     0   :  { %6 = vsyncpa [#allocation3], 0  ;;  %s104_s0 = inlined_call_operand.hbm [shape: f32[8,256], index: 0, kind: input, shape index: {}]   ;;  %s105_s1 = inlined_call_operand.hbm [shape: f32[8,256], index: 1, kind: output, shape index: {}]  }
   0x1   :  { %7 = vsyncpa [#allocation4], 0  ;;  %s86_s6 = smov [#allocation2]  }
   0x2   :  { %s14_s7 = sshll.u32 %s86_s6, 4  ;;  %s15_s7 = int_to_ptr.vmem [resolvable:$true] %s14_s7 }
   0x3   :  { %s50_s8 = scalar_lea.vmem %s15_s7, 256  ;;  %p55_p1 = scmp.lt.s32.totalorder %s15_s7, %s15_s7 }
   0x4   :  { %p51_p0 = scmp.ne.s32.totalorder %s15_s7, %s50_s8  ;;  %p56_p2 = scmp.lt.s32.totalorder %s50_s8, %s50_s8 }
   0x6   :  { %p57_p3 = por %p56_p2, %p55_p1 }
   0x8   :  { %p58_p4 = pnand %p57_p3, %p51_p0 }
   0xa   :  { %61 = shalt.err (!%p58_p4)
}
   0xb   :  { %17 = dma.hbm_to_vmem [thread:$0]  %s104_s0, 256, %s15_s7, [#allocation3]  }
   0xc   :  { %82 = dma.done.wait [#allocation3], 256  }
   0xd   :  { %83 = vsyncadd [#allocation3], 4294967040  ;;  %s87_s11 = smov [#allocation5]   ;;  %v21_v0 = vld [vmem:[#allocation2] sm:$0xff]  ;;  %v22_v1 = vld [vmem:[#allocation2 + $0x8] sm:$0xff] }
   0xe   :  { %s31_s12 = sshll.u32 %s87_s11, 4  ;;  %23 = vst [vmem:[#allocation5] sm:$0xff] %v21_v0  ;;  %24 = vst [vmem:[#allocation5 + $0x8] sm:$0xff] %v22_v1  ;;  %s32_s12 = int_to_ptr.vmem [resolvable:$true] %s31_s12 }
   0xf   :  { %s62_s13 = scalar_lea.vmem %s32_s12, 256  ;;  %p67_p6 = scmp.lt.s32.totalorder %s32_s12, %s32_s12 }
  0x10   :  { %p63_p5 = scmp.ne.s32.totalorder %s32_s12, %s62_s13  ;;  %p68_p7 = scmp.lt.s32.totalorder %s62_s13, %s62_s13 }
  0x12   :  { %p69_p8 = por %p68_p7, %p67_p6 }
  0x14   :  { %p70_p9 = pnand %p69_p8, %p63_p5 }
  0x16   :  { %73 = shalt.err (!%p70_p9)
}
  0x17   :  { %34 = dma.vmem_to_hbm [thread:$0]  %s32_s12, 256, %s105_s1, [#allocation4]  }
  0x18   :  { %84 = dma.done.wait [#allocation4], 256  }
  0x19   :  { %85 = vsyncadd [#allocation4], 4294967040 }
  0x1a   :  { %38 = vsyncpa [#allocation3], 1 }
  0x1b   :  { %39 = vsyncpa [#allocation4], 1 }

</bundles_post_ra>
